<compile_context>
chip_gen: v5e
topology: v5e:2x2
jax: 0.10.0
libtpu: 0.0.40
codegen_flags: <defaults>
</compile_context>

<pallas_src>
import functools

import jax
import jax.numpy as jnp
from jax.experimental import pallas as pl
from jax.experimental.pallas import tpu as pltpu

LANE = 128        # vreg lane width (last dim)
SUBLANE = 8       # vreg sublane count (second-to-last dim)
MAX_B_TILE = 1024 # upper bound on rows per grid step (VMEM permitting)


def _round_up(x, m):
    return ((x + m - 1) // m) * m


@functools.lru_cache(maxsize=1)
def _vmem_capacity_bytes():
    """Per-core VMEM capacity; conservative fallback = 64 MiB (v7x per-TC)."""
    try:
        return int(pltpu.get_tpu_info().vmem_capacity_bytes)
    except Exception:
        return 64 << 20


@functools.lru_cache(maxsize=1)
def _single_buffer_ok():
    """Probe whether pipeline_mode=pl.Buffered(1) (single-buffered resident blocks)
    lowers and runs correctly on this jax/libtpu; fall back to double-buffering if not."""
    try:
        def k(x_ref, o_ref):
            o_ref[...] = x_ref[...] + 1.0

        f = pl.pallas_call(
            k,
            out_shape=jax.ShapeDtypeStruct((2 * SUBLANE, LANE), jnp.float32),
            grid=(2,),
            in_specs=[pl.BlockSpec((SUBLANE, LANE), lambda i: (0, 0),
                                   pipeline_mode=pl.Buffered(1))],
            out_specs=pl.BlockSpec((SUBLANE, LANE), lambda i: (i, 0)),
        )
        r = jax.block_until_ready(f(jnp.ones((SUBLANE, LANE), jnp.float32)))
        return bool(jnp.allclose(r, 2.0))
    except Exception:
        return False


def _mlp_kernel(*refs, num_layers):
    """refs = (x_ref, w0_ref, b0_ref, w1_ref, b1_ref, ..., o_ref).

    Computes the full MLP for one batch tile entirely on-chip: matmuls on the MXU
    (f32 accumulate), bias add on the VPU, tanh on the EUP.
    """
    x_ref = refs[0]
    o_ref = refs[-1]
    param_refs = refs[1:-1]

    h = x_ref[...]
    for l in range(num_layers):
        w = param_refs[2 * l][...]
        b = param_refs[2 * l + 1][...]
        # Cast activations to the weight dtype (no-op for f32; bf16-native MXU path
        # otherwise); always accumulate in f32 and keep the bias add in f32.
        y = jnp.dot(h.astype(w.dtype), w, preferred_element_type=jnp.float32)
        y = y + b.astype(jnp.float32)
        if l < num_layers - 1:
            y = jnp.tanh(y)      # activation_fcn = tanh (hidden layers only)
        h = y
    o_ref[...] = h.astype(o_ref.dtype)


def mlp_forward_pallas(x, padded_params, *, b_tile, vmem_limit_bytes, single_buffer):
    """Fused forward.  x: (B, In) with B % b_tile == 0 (In is the real, unpadded width).
    padded_params: list of (W (K_l, OutPad_l), b (1, OutPad_l)); OutPad_l % 128 == 0."""
    B, in_dim = x.shape
    num_layers = len(padded_params)
    out_pad = padded_params[-1][0].shape[1]

    in_specs = [pl.BlockSpec((b_tile, in_dim), lambda i: (i, 0))]
    flat_params = []
    for w, b in padded_params:
        # Constant index_map -> parameters stay VMEM-resident across all batch tiles;
        # single-buffer them (when supported) to halve their VMEM footprint.
        if single_buffer:
            w_spec = pl.BlockSpec(w.shape, lambda i: (0, 0), pipeline_mode=pl.Buffered(1))
            b_spec = pl.BlockSpec(b.shape, lambda i: (0, 0), pipeline_mode=pl.Buffered(1))
        else:
            w_spec = pl.BlockSpec(w.shape, lambda i: (0, 0))
            b_spec = pl.BlockSpec(b.shape, lambda i: (0, 0))
        in_specs += [w_spec, b_spec]
        flat_params += [w, b]

    kernel = functools.partial(_mlp_kernel, num_layers=num_layers)

    return pl.pallas_call(
        kernel,
        out_shape=jax.ShapeDtypeStruct((B, out_pad), x.dtype),
        grid=(B // b_tile,),
        in_specs=in_specs,
        out_specs=pl.BlockSpec((b_tile, out_pad), lambda i: (i, 0)),
        compiler_params=pltpu.CompilerParams(
            # Batch tiles are independent -> megacore-shard them across TCs.
            dimension_semantics=("parallel",),
            vmem_limit_bytes=int(vmem_limit_bytes),
        ),
    )(x, *flat_params)


class NetPallas:
    """Mirror of the PyTorch Net: n_inputs -> hidden_widths... -> n_outputs with tanh
    after every layer except the last, as a single fused Pallas kernel."""

    def __init__(self, n_inputs, n_outputs, hidden_widths, key,
                 compute_dtype=jnp.float32):
        self.n_inputs = n_inputs
        self.n_outputs = n_outputs
        self.hidden_widths = tuple(hidden_widths)
        self.compute_dtype = jnp.dtype(compute_dtype)

        dims = [n_inputs] + list(self.hidden_widths) + [n_outputs]
        self.dims = dims
        num_layers = len(dims) - 1
        # Output-feature (N) dims are lane-padded (unmasked lane-dense stores, lane-aligned
        # MXU operands).  The first-layer K dim is left unpadded (full-dim block exemption).
        out_pads = [_round_up(d, LANE) for d in dims[1:]]
        in_dims = [n_inputs] + out_pads[:-1]
        self.out_pads = out_pads

        self.params = []          # real-shaped f32 params (reference / inspection)
        self.padded_params = []   # padded, compute-dtype weights (bias stays f32)
        for l in range(num_layers):
            fan_in, fan_out = dims[l], dims[l + 1]
            p_in, p_out = in_dims[l], out_pads[l]
            key, kw, kb = jax.random.split(key, 3)
            # Deterministic init mimicking torch.nn.Linear: U(-1/sqrt(fan_in), 1/sqrt(fan_in))
            bound = 1.0 / float(jnp.sqrt(jnp.float32(fan_in)))
            w = jax.random.uniform(kw, (fan_in, fan_out), jnp.float32, -bound, bound)
            b = jax.random.uniform(kb, (1, fan_out), jnp.float32, -bound, bound)
            self.params.append((w, b))
            # Zero padding is exact: padded output cols get 0 weight + 0 bias, tanh(0)=0,
            # and the corresponding padded K rows of the next layer are 0.
            w_pad = (jnp.zeros((p_in, p_out), jnp.float32)
                     .at[:fan_in, :fan_out].set(w).astype(self.compute_dtype))
            b_pad = jnp.zeros((1, p_out), jnp.float32).at[:, :fan_out].set(b)
            self.padded_params.append((w_pad, b_pad))

        self._single_buffer = _single_buffer_ok()
        wbuf = 1 if self._single_buffer else 2
        self._resident_param_bytes = wbuf * sum(
            int(w.size) * w.dtype.itemsize + int(b.size) * b.dtype.itemsize
            for w, b in self.padded_params)
        self._max_pad = max(out_pads)

        # Whole forward (optional batch pad -> fused pallas_call -> slice) under one jit.
        self._forward = jax.jit(self._forward_impl)

    # ---- tiling / VMEM sizing (Python-level; all shape-static) --------------------
    def _pick_b_tile(self, B, x_itemsize):
        cap = _vmem_capacity_bytes()
        budget = int(cap * 0.75)  # headroom for compiler scratch / semaphores
        # Per-row cost of a grid step: double-buffered x & out blocks + f32 intermediates.
        per_row = (2 * self.n_inputs * x_itemsize
                   + 2 * self.out_pads[-1] * x_itemsize
                   + 2 * self._max_pad * 4)
        avail = budget - self._resident_param_bytes
        # TODO(synk): if the resident parameters alone exceed the per-core VMEM budget,
        # stream the oversized layer (memory_space=pl.ANY + pltpu.emit_pipeline over K/N)
        # instead of keeping it fully resident.
        max_tile = max(SUBLANE,
                       min(MAX_B_TILE, (avail // max(per_row, 1)) // LANE * LANE))
        if B <= max_tile:
            return _round_up(B, SUBLANE)
        candidates = [t for t in (1024, 512, 256, 128) if t <= max_tile]
        if not candidates:
            return max(SUBLANE, (max_tile // SUBLANE) * SUBLANE)
        # Minimize batch over-padding; prefer the larger tile on ties.
        return min(candidates, key=lambda t: (_round_up(B, t) - B, -t))

    def _forward_impl(self, x, padded_params):
        B, in_dim = x.shape
        x_itemsize = x.dtype.itemsize
        b_tile = self._pick_b_tile(B, x_itemsize)
        B_pad = _round_up(B, b_tile)
        if B_pad != B:
            # Pad batch rows only (features stay unpadded); extra rows sliced away below.
            x_use = jnp.zeros((B_pad, in_dim), x.dtype).at[:B, :].set(x)
        else:
            x_use = x
        needed = (self._resident_param_bytes
                  + 2 * b_tile * (in_dim + self.out_pads[-1]) * x_itemsize
                  + 2 * b_tile * self._max_pad * 4)
        vmem_limit = int(min(_vmem_capacity_bytes(),
                             max(32 << 20, int(needed * 1.3))))
        out_pad = mlp_forward_pallas(
            x_use, padded_params, b_tile=b_tile,
            vmem_limit_bytes=vmem_limit, single_buffer=self._single_buffer)
        return out_pad[:B, : self.n_outputs]

    def __call__(self, x):
        return self._forward(x, self.padded_params)


def mlp_reference(x, params):
    """Plain-JAX reference with the real (unpadded) f32 params."""
    h = x
    for w, b in params[:-1]:
        h = jnp.tanh(h @ w + b)
    w, b = params[-1]
    return h @ w + b


if __name__ == "__main__":
    key = jax.random.PRNGKey(0)
    key, k_in, k_net, k_in2 = jax.random.split(key, 4)

    batch = 8
    n_inputs = 32
    hidden_widths = (64, 48)
    n_outputs = 16

    # f32 path, small batch (no padding at all: B=8 -> b_tile=8, features unpadded).
    net = NetPallas(n_inputs, n_outputs, hidden_widths, k_net)
    x = jax.random.normal(k_in, (batch, n_inputs), jnp.float32)
    out = jax.block_until_ready(net(x))
    ref = mlp_reference(x, net.params)
    assert out.shape == (batch, n_outputs)
    assert jnp.allclose(out, ref, atol=1e-5, rtol=1e-5)

    # Larger batch exercises the multi-tile parallel grid + minimal batch-padding path.
    x_big = jax.random.normal(k_in2, (2100, n_inputs), jnp.float32)
    out_big = jax.block_until_ready(net(x_big))
    ref_big = mlp_reference(x_big, net.params)
    assert out_big.shape == (2100, n_outputs)
    assert jnp.allclose(out_big, ref_big, atol=1e-5, rtol=1e-5)

    # bf16 weights/activations with f32 MXU accumulation (halves resident VMEM,
    # bf16-native MXU throughput); looser tolerance against the f32 reference.
    net_bf16 = NetPallas(n_inputs, n_outputs, hidden_widths, k_net,
                         compute_dtype=jnp.bfloat16)
    out_bf16 = jax.block_until_ready(net_bf16(x))
    assert out_bf16.shape == (batch, n_outputs)
    assert jnp.allclose(out_bf16, ref, atol=1e-1, rtol=1e-1)

    print("KERNEL_OK")
</pallas_src>

<mosaic_0001>
module attributes {stable_mosaic.version = 11 : i64} {
  func.func @k(%arg0: i32, %arg1: memref<8x128xf32, #tpu.memory_space<vmem>>, %arg2: memref<8x128xf32, #tpu.memory_space<vmem>>) attributes {dimension_semantics = [#tpu.dimension_semantics<arbitrary>], iteration_bounds = array<i64: 2>, scalar_prefetch = 0 : i64, scratch_operands = 0 : i64, tpu.core_type = #tpu.core_type<tc>, window_params = [{pipeline_mode = #tpu.pipeline_mode<synchronous>, transform_indices = @transform_0, window_bounds = array<i64: 8, 128>}, {transform_indices = @transform_1, window_bounds = array<i64: 8, 128>}]} {
    %c0 = arith.constant 0 : index
    %c0_0 = arith.constant 0 : index
    %0 = vector.load %arg1[%c0, %c0_0] : memref<8x128xf32, #tpu.memory_space<vmem>>, vector<8x128xf32>
    %cst = arith.constant 1.000000e+00 : f32
    %1 = vector.broadcast %cst : f32 to vector<8x128xf32>
    %2 = arith.addf %0, %1 : vector<8x128xf32>
    %c0_1 = arith.constant 0 : index
    %c0_2 = arith.constant 0 : index
    %3 = vector.load %arg2[%c0_1, %c0_2] : memref<8x128xf32, #tpu.memory_space<vmem>>, vector<8x128xf32>
    tpu.vector_store %arg2[%c0_1, %c0_2], %2 {strides = array<i32>} : memref<8x128xf32, #tpu.memory_space<vmem>>, vector<8x128xf32>,
    return
  }
  func.func @transform_0(%arg0: i32) -> (i32, i32) {
    %c0_i32 = arith.constant 0 : i32
    %c0_i32_0 = arith.constant 0 : i32
    %c0_i32_1 = arith.constant 0 : i32
    return %c0_i32, %c0_i32_0 : i32, i32
  }
  func.func @transform_1(%arg0: i32) -> (i32, i32) {
    %c0_i32 = arith.constant 0 : i32
    %c0_i32_0 = arith.constant 0 : i32
    return %arg0, %c0_i32 : i32, i32
  }
}

module attributes {stable_mosaic.version = 11 : i64} {
  func.func @_mlp_kernel(%arg0: i32, %arg1: memref<8x32xf32, #tpu.memory_space<vmem>>, %arg2: memref<32x128xf32, #tpu.memory_space<vmem>>, %arg3: memref<1x128xf32, #tpu.memory_space<vmem>>, %arg4: memref<128x128xf32, #tpu.memory_space<vmem>>, %arg5: memref<1x128xf32, #tpu.memory_space<vmem>>, %arg6: memref<128x128xf32, #tpu.memory_space<vmem>>, %arg7: memref<1x128xf32, #tpu.memory_space<vmem>>, %arg8: memref<8x128xf32, #tpu.memory_space<vmem>>) attributes {dimension_semantics = [#tpu.dimension_semantics<parallel>], iteration_bounds = array<i64: 1>, scalar_prefetch = 0 : i64, scratch_operands = 0 : i64, tpu.core_type = #tpu.core_type<tc>, window_params = [{transform_indices = @transform_0, window_bounds = array<i64: 8, 32>}, {pipeline_mode = #tpu.pipeline_mode<synchronous>, transform_indices = @transform_1, window_bounds = array<i64: 32, 128>}, {pipeline_mode = #tpu.pipeline_mode<synchronous>, transform_indices = @transform_2, window_bounds = array<i64: 1, 128>}, {pipeline_mode = #tpu.pipeline_mode<synchronous>, transform_indices = @transform_3, window_bounds = array<i64: 128, 128>}, {pipeline_mode = #tpu.pipeline_mode<synchronous>, transform_indices = @transform_4, window_bounds = array<i64: 1, 128>}, {pipeline_mode = #tpu.pipeline_mode<synchronous>, transform_indices = @transform_5, window_bounds = array<i64: 128, 128>}, {pipeline_mode = #tpu.pipeline_mode<synchronous>, transform_indices = @transform_6, window_bounds = array<i64: 1, 128>}, {transform_indices = @transform_7, window_bounds = array<i64: 8, 128>}]} {
    %c0 = arith.constant 0 : index
    %c0_0 = arith.constant 0 : index
    %0 = vector.load %arg1[%c0, %c0_0] : memref<8x32xf32, #tpu.memory_space<vmem>>, vector<8x32xf32>
    %c0_1 = arith.constant 0 : index
    %c0_2 = arith.constant 0 : index
    %1 = vector.load %arg2[%c0_1, %c0_2] : memref<32x128xf32, #tpu.memory_space<vmem>>, vector<32x128xf32>
    %c0_3 = arith.constant 0 : index
    %c0_4 = arith.constant 0 : index
    %2 = vector.load %arg3[%c0_3, %c0_4] : memref<1x128xf32, #tpu.memory_space<vmem>>, vector<1x128xf32>
    %cst = arith.constant dense<0.000000e+00> : vector<8x128xf32>
    %3 = tpu.matmul %0, %1, %cst {dimension_numbers = #tpu.dot_dimension_numbers<[1], [0], [0], [1], [0, 0, 1, 1], [], []>} : vector<8x32xf32>, vector<32x128xf32>, vector<8x128xf32> -> vector<8x128xf32>
    %4 = vector.broadcast %2 : vector<1x128xf32> to vector<8x128xf32>
    %5 = arith.addf %3, %4 : vector<8x128xf32>
    %6 = math.tanh %5 : vector<8x128xf32>
    %c0_5 = arith.constant 0 : index
    %c0_6 = arith.constant 0 : index
    %7 = vector.load %arg4[%c0_5, %c0_6] : memref<128x128xf32, #tpu.memory_space<vmem>>, vector<128x128xf32>
    %c0_7 = arith.constant 0 : index
    %c0_8 = arith.constant 0 : index
    %8 = vector.load %arg5[%c0_7, %c0_8] : memref<1x128xf32, #tpu.memory_space<vmem>>, vector<1x128xf32>
    %cst_9 = arith.constant dense<0.000000e+00> : vector<8x128xf32>
    %9 = tpu.matmul %6, %7, %cst_9 {dimension_numbers = #tpu.dot_dimension_numbers<[1], [0], [0], [1], [0, 0, 1, 1], [], []>} : vector<8x128xf32>, vector<128x128xf32>, vector<8x128xf32> -> vector<8x128xf32>
    %10 = vector.broadcast %8 : vector<1x128xf32> to vector<8x128xf32>
    %11 = arith.addf %9, %10 : vector<8x128xf32>
    %12 = math.tanh %11 : vector<8x128xf32>
    %c0_10 = arith.constant 0 : index
    %c0_11 = arith.constant 0 : index
    %13 = vector.load %arg6[%c0_10, %c0_11] : memref<128x128xf32, #tpu.memory_space<vmem>>, vector<128x128xf32>
    %c0_12 = arith.constant 0 : index
    %c0_13 = arith.constant 0 : index
    %14 = vector.load %arg7[%c0_12, %c0_13] : memref<1x128xf32, #tpu.memory_space<vmem>>, vector<1x128xf32>
    %cst_14 = arith.constant dense<0.000000e+00> : vector<8x128xf32>
    %15 = tpu.matmul %12, %13, %cst_14 {dimension_numbers = #tpu.dot_dimension_numbers<[1], [0], [0], [1], [0, 0, 1, 1], [], []>} : vector<8x128xf32>, vector<128x128xf32>, vector<8x128xf32> -> vector<8x128xf32>
    %16 = vector.broadcast %14 : vector<1x128xf32> to vector<8x128xf32>
    %17 = arith.addf %15, %16 : vector<8x128xf32>
    %c0_15 = arith.constant 0 : index
    %c0_16 = arith.constant 0 : index
    %18 = vector.load %arg8[%c0_15, %c0_16] : memref<8x128xf32, #tpu.memory_space<vmem>>, vector<8x128xf32>
    tpu.vector_store %arg8[%c0_15, %c0_16], %17 {strides = array<i32>} : memref<8x128xf32, #tpu.memory_space<vmem>>, vector<8x128xf32>,
    return
  }
  func.func @transform_0(%arg0: i32) -> (i32, i32) {
    %c0_i32 = arith.constant 0 : i32
    %c0_i32_0 = arith.constant 0 : i32
    return %arg0, %c0_i32 : i32, i32
  }
  func.func @transform_1(%arg0: i32) -> (i32, i32) {
    %c0_i32 = arith.constant 0 : i32
    %c0_i32_0 = arith.constant 0 : i32
    %c0_i32_1 = arith.constant 0 : i32
    return %c0_i32, %c0_i32_0 : i32, i32
  }
  func.func @transform_2(%arg0: i32) -> (i32, i32) {
    %c0_i32 = arith.constant 0 : i32
    %c0_i32_0 = arith.constant 0 : i32
    %c0_i32_1 = arith.constant 0 : i32
    return %c0_i32, %c0_i32_0 : i32, i32
  }
  func.func @transform_3(%arg0: i32) -> (i32, i32) {
    %c0_i32 = arith.constant 0 : i32
    %c0_i32_0 = arith.constant 0 : i32
    %c0_i32_1 = arith.constant 0 : i32
    return %c0_i32, %c0_i32_0 : i32, i32
  }
  func.func @transform_4(%arg0: i32) -> (i32, i32) {
    %c0_i32 = arith.constant 0 : i32
    %c0_i32_0 = arith.constant 0 : i32
    %c0_i32_1 = arith.constant 0 : i32
    return %c0_i32, %c0_i32_0 : i32, i32
  }
  func.func @transform_5(%arg0: i32) -> (i32, i32) {
    %c0_i32 = arith.constant 0 : i32
    %c0_i32_0 = arith.constant 0 : i32
    %c0_i32_1 = arith.constant 0 : i32
    return %c0_i32, %c0_i32_0 : i32, i32
  }
  func.func @transform_6(%arg0: i32) -> (i32, i32) {
    %c0_i32 = arith.constant 0 : i32
    %c0_i32_0 = arith.constant 0 : i32
    %c0_i32_1 = arith.constant 0 : i32
    return %c0_i32, %c0_i32_0 : i32, i32
  }
  func.func @transform_7(%arg0: i32) -> (i32, i32) {
    %c0_i32 = arith.constant 0 : i32
    %c0_i32_0 = arith.constant 0 : i32
    return %arg0, %c0_i32 : i32, i32
  }
}

</mosaic_0001>

<bundles_post_ra>
// kernel: tpu_custom_call.1
= control target key start
LH: loop header
LB: loop body
LE: loop exit
PB: predicated region body
PF: predicated region fallthrough
CT: control target
= control target key end

     0   :  { %6 = vsyncpa [#allocation3], 0  ;;  %s441_s0 = inlined_call_operand.hbm [shape: f32[8,128], index: 0, kind: input, shape index: {}]   ;;  %s442_s1 = inlined_call_operand.hbm [shape: f32[16,128], index: 1, kind: output, shape index: {}]  }
   0x1   :  { %7 = vsyncpa [#allocation4], 0 }
   0x2   :  { %9 = vsyncpa [#allocation4 + $0x1], 0  ;;  %s357_s6 = smov 0   ;;  %s359_s7 = smov 0  }
   0x3   :  { %s361_s8 = smov 0   ;;  %s363_s9 = smov 0  }
   0x4 LB: > { %s378_s10 = sadd.s32 4294967295, %s344_s9   ;;  %s188_s11 = sadd.s32 4294967294, %s344_s9   ;;  %s344_s9 = sphi %s363_s9, %s448_s9   ;;  %s340_s8 = sphi %s361_s8, %s447_s8   ;;  %s336_s7 = sphi %s359_s7, %s446_s7   ;;  %s332_s6 = sphi %s357_s6, %s445_s6  }
   0x5   : > { %s382_s12 = sadd.s32 1, %s344_s9   ;;  %s43_s13 = sadd.s32 1, %s340_s8 }
   0x6   : > { %s40_s14 = ssub.s32 %s344_s9, %s382_s12  ;;  %p53_p0 = scmp.ne.s32.totalorder %s340_s8, %s336_s7 }
   0x7   : > { %p41_p1 = scmp.eq.s32.totalorder %s40_s14, 0  ;;  %p54_p2 = scmp.eq.s32.totalorder %s378_s10, 1 }
   0x8   : > { %p59_p3 = scmp.ne.s32.totalorder %s336_s7, %s332_s6  ;;  %p60_p4 = scmp.eq.s32.totalorder %s188_s11, 1 }
   0x9   : > { %s393_s15 = scalar_select %p41_p1, %s340_s8, %s43_s13  }
   0xa   : > { %p395_p5 = por %p54_p2, %p53_p0  ;;  %p399_p6 = por %p60_p4, %p59_p3 }
   0xb   : > { %p189_p7 = scmp.ge.s32.totalorder %s344_s9, 1  ;;  %p67_p8 = scmp.lt.s32.totalorder %s344_s9, 3 }
   0xc   : > { %p212_p9 = scmp.eq.s32.totalorder %s378_s10, 0  ;;  %s79_s20 = sshll.u32 %s441_s0, 4  ;;  %s80_s20 = int_to_ptr.hbm [resolvable:$true] %s79_s20 }
   0xd   : > { %p68_p10 = pnand %p189_p7, %p67_p8  ;;  %s346_s21 = smov [#allocation2]  }
   0xe   : > { %s81_s22 = sshll.u32 %s346_s21, 4  ;;  %s82_s22 = int_to_ptr.vmem [resolvable:$true] %s81_s22 }
   0xf   : > { %p204_p11 = pneg %p68_p10  ;;  %94 = sbr.rel (%p68_p10) target bundleno = 37 (0x25), region = 24 }
  0x11   : > { %p205_p12 = pnand %p212_p9, %p204_p11 }
  0x13   : > { %207 = dma.hbm_to_vmem [thread:$0]  (!%p205_p12), %s80_s20, 128, %s82_s22, [#allocation3]  }
  0x14   : > { %323 = dma.done.wait (%p212_p9), [#allocation3], 128  }
  0x15   : > { %325 = vsyncadd (%p212_p9), [#allocation3], 4294967168  ;;  %s107_s23 = sand.u32 1, %s336_s7   ;;  %s195_s24 = sshll.u32 %s378_s10, 3  ;;  %v110_v0 = vld [vmem:[#allocation2] sm:$0xff] }
  0x16   : > { %s193_s25 = sshll.u32 %s107_s23, 3  ;;  %s124_s28 = scalar_lea.hbm %s442_s1, %s195_s24  ;;  %v111_v1 = vadd.f32 1.0, %v110_v0 }
  0x17   : > { %s109_s29 = scalar_lea.vmem [#allocation5], %s193_s25  ;;  %s128_s2 = sshll.u32 %s124_s28, 4  ;;  %s129_s2 = int_to_ptr.hbm [resolvable:$true] %s128_s2 }
  0x18   : > { %s126_s30 = sshll.u32 %s109_s29, 4  ;;  %112 = vst [vmem:[%s109_s29] sm:$0xff] %v111_v1  ;;  %s114_s3 = scalar_lea.sflag [#allocation4], %s107_s23  ;;  %s127_s30 = int_to_ptr.vmem [resolvable:$true] %s126_s30 }
  0x19   : > { %s292_s4 = sshra.s32 %s129_s2, 4  ;;  %s298_s13 = scalar_lea.hbm %s442_s1, 16  ;;  %s293_s4 = int_to_ptr.hbm [resolvable:$true] %s292_s4 }
  0x1a   : > { %s294_s5 = scalar_lea.hbm %s293_s4, 8  ;;  %p299_p2 = scmp.lt.s32.totalorder %s293_s4, %s442_s1 }
  0x1b   : > { %p295_p13 = scmp.ne.s32.totalorder %s293_s4, %s294_s5  ;;  %p300_p3 = scmp.lt.s32.totalorder %s298_s13, %s294_s5 }
  0x1d   : > { %p296_p0 = pnand %p295_p13, %p395_p5  ;;  %p301_p4 = por %p300_p3, %p299_p2 }
  0x1f   : > { %p297_p1 = pneg %p296_p0 }
  0x21   : > { %p302_p7 = pnand %p301_p4, %p297_p1 }
  0x23   : > { %305 = shalt.err (!%p302_p7)
}
  0x24   : > { %202 = dma.vmem_to_hbm [thread:$0]  (%p395_p5), %s127_s30, 128, %s129_s2, %s114_s3  }
  0x25 PF: > { %p214_p8 = scmp.ge.s32.totalorder %s344_s9, 2  ;;  %s140_s19 = sand.u32 1, %s332_s6  }
  0x26   : > { %s141_s20 = scalar_lea.sflag [#allocation4], %s140_s19 }
  0x27   : > { %p209_p9 = pnand %p214_p8, %p399_p6 }
  0x29   : > { %p210_p10 = pneg %p209_p9 }
  0x2b   : > { %327 = dma.done.wait (%p210_p10), %s141_s20, 128  }
  0x2c   : > { %329 = vsyncadd (%p210_p10), %s141_s20, 4294967168  ;;  %p12_p11 = scmp.ge.s32.totalorder %s382_s12, 4   ;;  %s445_s6 = smov %s336_s7 }
  0x2d   : > { %s446_s7 = smov %s340_s8  ;;  %s447_s8 = smov %s393_s15 }
  0x2e   : > { %s448_s9 = smov %s382_s12  ;;  %14 = sbr.rel (!%p12_p11) target bundleno = 4 (0x4), region = 61 }
  0x33   :  { %147 = vsyncpa [#allocation3], 1 }
  0x34   :  { %149 = vsyncpa [#allocation3 + $0x1], 1 }
  0x35   :  { %150 = vsyncpa [#allocation4], 1 }
  0x36   :  { %152 = vsyncpa [#allocation4 + $0x1], 1 }

// kernel: _forward_impl.1
= control target key start
LH: loop header
LB: loop body
LE: loop exit
PB: predicated region body
PF: predicated region fallthrough
CT: control target
= control target key end

     0   :  { %12 = vsyncpa [#allocation3], 0  ;;  %s437_s0 = inlined_call_operand.hbm [shape: f32[8,32], index: 0, kind: input, shape index: {}]   ;;  %s438_s1 = inlined_call_operand.hbm [shape: f32[32,128], index: 1, kind: input, shape index: {}]   ;;  %s439_s2 = inlined_call_operand.vmem [shape: f32[1,128], index: 2, kind: input, shape index: {}]   ;;  %s440_s3 = inlined_call_operand.hbm [shape: f32[128,128], index: 3, kind: input, shape index: {}]   ;;  %s441_s4 = inlined_call_operand.vmem [shape: f32[1,128], index: 4, kind: input, shape index: {}]   ;;  %s442_s5 = inlined_call_operand.hbm [shape: f32[128,128], index: 5, kind: input, shape index: {}]   ;;  %s443_s6 = inlined_call_operand.vmem [shape: f32[1,128], index: 6, kind: input, shape index: {}]   ;;  %s444_s7 = inlined_call_operand.hbm [shape: f32[8,128], index: 7, kind: output, shape index: {}]  }
   0x1   :  { %13 = vsyncpa [#allocation6], 0 }
   0x2   :  { %14 = vsyncpa [#allocation9], 0  ;;  %s31_s26 = sshll.u32 %s438_s1, 4  ;;  %s32_s26 = int_to_ptr.hbm [resolvable:$true] %s31_s26 }
   0x3   :  { %15 = vsyncpa [#allocation4], 0  ;;  %s366_s27 = smov [#allocation5]   ;;  %s21_s8 = sshll.u32 %s437_s0, 4  ;;  %s22_s8 = int_to_ptr.hbm [resolvable:$true] %s21_s8 }
   0x4   :  { %s33_s28 = sshll.u32 %s366_s27, 4  ;;  %s367_s9 = smov 128   ;;  %s34_s28 = int_to_ptr.vmem [resolvable:$true] %s33_s28 }
   0x5   :  { %s368_s10 = smov 8   ;;  %s369_s11 = smov [#allocation2]  }
   0x6   :  { %39 = dma.hbm_to_vmem [thread:$0]  %s32_s26, 512, %s34_s28, [#allocation6], %s367_s9, %s367_s9, %s368_s10  }
   0x7   :  { %s23_s12 = sshll.u32 %s369_s11, 4  ;;  %s46_s15 = sshll.u32 %s440_s3, 4  ;;  %s24_s12 = int_to_ptr.vmem [resolvable:$true] %s23_s12  ;;  %s47_s15 = int_to_ptr.hbm [resolvable:$true] %s46_s15 }
   0x8   :  { %26 = dma.hbm_to_vmem [thread:$0]  %s22_s8, 128, %s24_s12, [#allocation3]  }
   0x9   :  { %s61_s17 = sshll.u32 %s442_s5, 4  ;;  %s370_s18 = smov [#allocation7]   ;;  %s62_s17 = int_to_ptr.hbm [resolvable:$true] %s61_s17 }
   0xa   :  { %s48_s19 = sshll.u32 %s370_s18, 4  ;;  %s371_s0 = smov [#allocation8]   ;;  %s49_s19 = int_to_ptr.vmem [resolvable:$true] %s48_s19 }
   0xb   :  { %54 = dma.hbm_to_vmem [thread:$0]  %s47_s15, 2048, %s49_s19, [#allocation6], %s367_s9, %s367_s9, %s368_s10  }
   0xc   :  { %s63_s20 = sshll.u32 %s371_s0, 4  ;;  %s64_s20 = int_to_ptr.vmem [resolvable:$true] %s63_s20 }
   0xd   :  { %69 = dma.hbm_to_vmem [thread:$0]  %s62_s17, 2048, %s64_s20, [#allocation9], %s367_s9, %s367_s9, %s368_s10  }
   0xe   :  { %358 = dma.done.wait [#allocation3], 128  }
   0xf   :  { %359 = vsyncadd [#allocation3], 4294967168 }
  0x10   :  { %360 = dma.done.wait [#allocation6], 2560  }
  0x11   :  { %361 = vsyncadd [#allocation6], 4294964736 }
  0x12   :  { %362 = dma.done.wait [#allocation9], 2048  }
  0x13   :  { %363 = vsyncadd [#allocation9], 4294965248  ;;  %v92_v0 = vld [vmem:[#allocation5 + $0x18] sm:$0xff]  ;;  %v91_v1 = vld [vmem:[#allocation5 + $0x10] sm:$0xff]  ;;  %vm97_vm0 = vcmask 261120   ;;  %s372_s24 = smov [#allocation10]  }
  0x14   :  { %113 = vmatpush.msra.mxu0 %v92_v0  ;;  %v137_v2 = vld [vmem:[#allocation7 + $0x78] sm:$0xff]  ;;  %v90_v3 = vld [vmem:[#allocation5 + $0x8] sm:$0xff]  ;;  %v136_v4 = vld [vmem:[#allocation7 + $0x70] sm:$0xff]  ;;  %s209_s25 = sshll.u32 %s372_s24, 4  ;;  %s211_s28 = sshll.u32 %s444_s7, 4  ;;  %s210_s25 = int_to_ptr.vmem [resolvable:$true] %s209_s25  ;;  %s212_s28 = int_to_ptr.hbm [resolvable:$true] %s211_s28 }
  0x15   :  { %142 = vmatpush.msra.mxu1 %v137_v2  ;;  %v135_v5 = vld [vmem:[#allocation7 + $0x68] sm:$0xff]  ;;  %v89_v6 = vld [vmem:[#allocation5] sm:$0xff]  ;;  %v88_v7 = vld [vmem:[#allocation2] sm:$0xff] }
  0x16   :  { %114 = vmatpush.msra.mxu0 %v91_v1  ;;  %v134_v8 = vld [vmem:[#allocation7 + $0x60] sm:$0xff]  ;;  %v133_v9 = vld [vmem:[#allocation7 + $0x58] sm:$0xff]  ;;  %v132_v10 = vld [vmem:[#allocation7 + $0x50] sm:$0xff] }
  0x17   :  { %143 = vmatpush.msra.mxu1 %v136_v4  ;;  %v131_v11 = vld [vmem:[#allocation7 + $0x48] sm:$0xff]  ;;  %v130_v12 = vld [vmem:[#allocation7 + $0x40] sm:$0xff]  ;;  %v129_v13 = vld [vmem:[#allocation7 + $0x38] sm:$0xff] }
  0x18   :  { %115 = vmatpush.msra.mxu0 %v90_v3  ;;  %v128_v14 = vld [vmem:[#allocation7 + $0x30] sm:$0xff]  ;;  %v127_v15 = vld [vmem:[#allocation7 + $0x28] sm:$0xff]  ;;  %v126_v16 = vld [vmem:[#allocation7 + $0x20] sm:$0xff] }
  0x19   :  { %144 = vmatpush.msra.mxu1 %v135_v5  ;;  %v125_v17 = vld [vmem:[#allocation7 + $0x18] sm:$0xff]  ;;  %v124_v18 = vld [vmem:[#allocation7 + $0x10] sm:$0xff]  ;;  %v123_v19 = vld [vmem:[#allocation7 + $0x8] sm:$0xff] }
  0x1a   :  { %116 = vmatpush.msra.mxu0 %v89_v6  ;;  %v122_v20 = vld [vmem:[#allocation7] sm:$0xff]  ;;  %v178_v21 = vld [vmem:[#allocation8 + $0x78] sm:$0xff]  ;;  %v177_v22 = vld [vmem:[#allocation8 + $0x70] sm:$0xff] }
  0x1b   :  { %223 = vmatmul.msk.f32.vlgmr.msra.gmra.mxu0 %vm97_vm0, %v88_v7  ;;  %145 = vmatpush.msra.mxu1 %v134_v8  ;;  %v176_v23 = vld [vmem:[#allocation8 + $0x68] sm:$0xff]  ;;  %v175_v24 = vld [vmem:[#allocation8 + $0x60] sm:$0xff]  ;;  %v174_v25 = vld [vmem:[#allocation8 + $0x58] sm:$0xff] }
  0x1c   :  { %183 = vmatpush.msra.mxu2 %v178_v21  ;;  %v173_v26 = vld [vmem:[#allocation8 + $0x50] sm:$0xff]  ;;  %v172_v27 = vld [vmem:[#allocation8 + $0x48] sm:$0xff]  ;;  %v171_v28 = vld [vmem:[#allocation8 + $0x40] sm:$0xff] }
  0x1d   :  { %146 = vmatpush.msra.mxu1 %v133_v9  ;;  %v170_v29 = vld [vmem:[#allocation8 + $0x38] sm:$0xff]  ;;  %v169_v30 = vld [vmem:[#allocation8 + $0x30] sm:$0xff]  ;;  %v168_v31 = vld [vmem:[#allocation8 + $0x28] sm:$0xff] }
  0x1e   :  { %184 = vmatpush.msra.mxu2 %v177_v22  ;;  %v231_v32 = vld [vmem:[%s439_s2] ss:$0 sm:$0xff]  ;;  %v167_v36 = vld [vmem:[#allocation8 + $0x20] sm:$0xff]  ;;  %v165_v38 = vld [vmem:[#allocation8 + $0x10] sm:$0xff] }
  0x1f   :  { %147 = vmatpush.msra.mxu1 %v132_v10  ;;  %v166_v37 = vld [vmem:[#allocation8 + $0x18] sm:$0xff]  ;;  %v164_v39 = vld [vmem:[#allocation8 + $0x8] sm:$0xff]  ;;  %v163_v40 = vld [vmem:[#allocation8] sm:$0xff] }
  0x20   :  { %185 = vmatpush.msra.mxu2 %v176_v23  ;;  %v232_v41 = vld [vmem:[%s441_s4] ss:$0 sm:$0xff] }
  0x21   :  { %148 = vmatpush.msra.mxu1 %v131_v11  ;;  %v233_v45 = vld [vmem:[%s443_s6] ss:$0 sm:$0xff] }
  0x22   :  { %186 = vmatpush.msra.mxu2 %v175_v24 }
  0x23   :  { %149 = vmatpush.msra.mxu1 %v130_v12 }
  0x24   :  { %187 = vmatpush.msra.mxu2 %v174_v25 }
  0x25   :  { %150 = vmatpush.msra.mxu1 %v129_v13 }
  0x26   :  { %188 = vmatpush.msra.mxu2 %v173_v26 }
  0x27   :  { %151 = vmatpush.msra.mxu1 %v128_v14 }
  0x28   :  { %189 = vmatpush.msra.mxu2 %v172_v27 }
  0x29   :  { %152 = vmatpush.msra.mxu1 %v127_v15 }
  0x2a   :  { %190 = vmatpush.msra.mxu2 %v171_v28 }
  0x2b   :  { %153 = vmatpush.msra.mxu1 %v126_v16 }
  0x2c   :  { %191 = vmatpush.msra.mxu2 %v170_v29 }
  0x2d   :  { %154 = vmatpush.msra.mxu1 %v125_v17 }
  0x2e   :  { %192 = vmatpush.msra.mxu2 %v169_v30 }
  0x2f   :  { %155 = vmatpush.msra.mxu1 %v124_v18 }
  0x30   :  { %193 = vmatpush.msra.mxu2 %v168_v31 }
  0x31   :  { %156 = vmatpush.msra.mxu1 %v123_v19 }
  0x32   :  { %194 = vmatpush.msra.mxu2 %v167_v36 }
  0x33   :  { %157 = vmatpush.msra.mxu1 %v122_v20 }
  0x34   :  { %195 = vmatpush.msra.mxu2 %v166_v37 }
  0x36   :  { %196 = vmatpush.msra.mxu2 %v165_v38 }
  0x38   :  { %197 = vmatpush.msra.mxu2 %v164_v39 }
  0x3a   :  { %198 = vmatpush.msra.mxu2 %v163_v40 }
  0x98   :  { %v118_v33 = vpop.f32.mrf.mxu0 }
  0x99   :  { %v119_v34 = vadd.f32 %v231_v32, %v118_v33 }
  0x9b   :  { %234 = vtanh.f32 %v119_v34 }
  0xa1   :  { %v235_v35 = vpop.eup %234 }
  0xa2   :  { %158 = vmatmul.f32.vlgmr.msra.gmra.mxu1 %v235_v35 }
 0x11f   :  { %v159_v42 = vpop.f32.mrf.mxu1 }
 0x120   :  { %v160_v43 = vadd.f32 %v232_v41, %v159_v42 }
 0x122   :  { %236 = vtanh.f32 %v160_v43 }
 0x128   :  { %v237_v44 = vpop.eup %236 }
 0x129   :  { %199 = vmatmul.f32.vlgmr.msra.gmra.mxu2 %v237_v44 }
 0x1ac   :  { %v200_v46 = vpop.f32.mrf.mxu2 }
 0x1ad   :  { %v201_v47 = vadd.f32 %v233_v45, %v200_v46 }
 0x1af   :  { %203 = vst [vmem:[#allocation10] sm:$0xff] %v201_v47 }
 0x1b0   :  { %214 = dma.vmem_to_hbm [thread:$0]  %s210_s25, 128, %s212_s28, [#allocation4]  }
 0x1b1   :  { %364 = dma.done.wait [#allocation4], 128  }
 0x1b2   :  { %365 = vsyncadd [#allocation4], 4294967168 }
 0x1b3   :  { %219 = vsyncpa [#allocation3], 1 }
 0x1b4   :  { %220 = vsyncpa [#allocation6], 1 }
 0x1b5   :  { %221 = vsyncpa [#allocation9], 1 }
 0x1b6   :  { %222 = vsyncpa [#allocation4], 1 }

</bundles_post_ra>
